<compile_context>
chip_gen: v6e
topology: v6e:2x2x1
jax: 0.10.0
libtpu: 0.0.40
codegen_flags: <defaults>
</compile_context>

<pallas_src>
import functools

import jax
import jax.numpy as jnp
from jax.experimental import pallas as pl
from jax.experimental.pallas import tpu as pltpu


def _round_up(n, m):
    return ((n + m - 1) // m) * m


def autoencoder_kernel(x_ref,                 # (TB, in_dim) native dtype
                       w1_ref, b1_ref,        # (in_dim, H), (1, H)
                       wcat_ref, bcat_ref,    # (H, slab+H) = [w2_slab | w23], (1, slab+H)
                       w4_ref, b4_ref,        # (H, slab) real w4 in cols [0,in_dim), (1, slab)
                       out_ref):              # (TB, slab) = [x_hat | z | zeros], lane-dense
    f32 = jnp.float32
    cdt = w1_ref.dtype                        # compute/storage dtype for MXU inputs (bf16)
    slab = out_ref.shape[-1]

    x = x_ref[...].astype(cdt)                # cast on the VMEM tile (no wrapper HBM pass)

    # encoder: Linear(in, 128) + ReLU
    h1 = jnp.dot(x, w1_ref[...], preferred_element_type=f32) + b1_ref[...].astype(f32)
    h1 = jnp.maximum(h1, 0.0).astype(cdt)

    # Fused second stage: one N = slab+128 matmul produces both
    #   zs  = h1 @ w2_slab + b2_slab   (z placed lane-dense in cols [z_off, z_off+latent), 0 elsewhere)
    #   h2p = h1 @ (w2 @ w3) + (b2 @ w3 + b3)   (decoder layer-1 pre-activation, w3 folded in)
    cat = jnp.dot(h1, wcat_ref[...], preferred_element_type=f32) + bcat_ref[...].astype(f32)
    zs = cat[:, :slab]
    h2 = jnp.maximum(cat[:, slab:], 0.0).astype(cdt)

    # decoder: Linear(128, in). Zero-padded w4/b4 place x_hat in slab cols [0, in_dim).
    xs = jnp.dot(h2, w4_ref[...], preferred_element_type=f32) + b4_ref[...].astype(f32)

    # Disjoint non-zero columns -> single unmasked, 128-aligned store of [x_hat | z | 0].
    out_ref[...] = (xs + zs).astype(out_ref.dtype)


def pack_params(params, store_dtype=jnp.bfloat16):
    """Fold w3 into w2 (no nonlinearity between them), zero-pad to lane-dense slab layouts, cast once."""
    in_dim, hidden = params["w1"].shape
    latent = params["w2"].shape[1]
    slab = _round_up(in_dim + latent, 128)
    z_off = in_dim
    f32 = jnp.float32

    w2 = params["w2"].astype(f32)
    b2 = params["b2"].astype(f32)
    w3 = params["w3"].astype(f32)
    b3 = params["b3"].astype(f32)

    # Algebraic fusion of encoder-layer-2 and decoder-layer-1 (precomputed in f32).
    w23 = w2 @ w3                                    # (hidden, hidden)
    b23 = b2 @ w3 + b3                               # (1, hidden)

    # Zero-padded slab layouts (lane-dense, no masked stores / lane shuffles in the kernel).
    w2s = jnp.zeros((hidden, slab), f32).at[:, z_off:z_off + latent].set(w2)
    b2s = jnp.zeros((1, slab), f32).at[:, z_off:z_off + latent].set(b2)
    w4s = jnp.zeros((hidden, slab), f32).at[:, :in_dim].set(params["w4"].astype(f32))
    b4s = jnp.zeros((1, slab), f32).at[:, :in_dim].set(params["b4"].astype(f32))

    # Concatenate so the second matmul is N = slab + hidden (= 256 here): fills the 256-wide MXU.
    wcat = jnp.concatenate([w2s, w23], axis=1)       # (hidden, slab + hidden)
    bcat = jnp.concatenate([b2s, b23], axis=1)       # (1, slab + hidden)

    c = lambda a: a.astype(store_dtype)
    packed = dict(w1=c(params["w1"]), b1=c(params["b1"]),
                  wcat=c(wcat), bcat=c(bcat),
                  w4=c(w4s), b4=c(b4s))
    meta = dict(input_dim=in_dim, hidden=hidden, latent_dim=latent, slab=slab, z_off=z_off)
    return packed, meta


def _default_block_rows():
    try:
        kind = jax.devices()[0].device_kind.lower()
    except Exception:
        kind = ""
    # v7x: 64 MiB VMEM per TC and 2 TensorCores -> smaller tiles, >=2 grid steps shard across cores.
    return 2048 if "7" in kind else 4096


def autoencoder_forward(x, packed, meta, *, block_rows=None):
    """x: (B, input_dim) in its native dtype. Returns (x_hat (B, input_dim), z (B, latent_dim))."""
    in_dim, hidden = meta["input_dim"], meta["hidden"]
    latent, slab, z_off = meta["latent_dim"], meta["slab"], meta["z_off"]
    store_dtype = packed["w1"].dtype

    if block_rows is None:
        block_rows = _default_block_rows()

    B = x.shape[0]
    # Tile sized to the batch: amortizes the ~0.35us/step overhead without padding up to
    # block_rows-1 garbage rows when B is just past a tile multiple. Multiple of 16 for bf16 packing.
    steps = pl.cdiv(B, block_rows)
    tb = _round_up(pl.cdiv(B, steps), 16)
    b_pad = _round_up(B, tb)
    xp = x if b_pad == B else jnp.pad(x, ((0, b_pad - B), (0, 0)))
    grid = (b_pad // tb,)

    x_item = jnp.dtype(x.dtype).itemsize
    s_item = jnp.dtype(store_dtype).itemsize
    bytes_w = sum(int(v.size) * v.dtype.itemsize for v in packed.values())

    # Per-step working-set estimate (double-buffered I/O tiles + f32 intermediates + weights),
    # with 2x headroom; keep below the v7x 64 MiB physical VMEM.
    vmem_need = (2 * tb * in_dim * x_item            # x tiles (double-buffered)
                 + 2 * tb * slab * s_item            # out tiles (double-buffered)
                 + tb * (slab + 2 * hidden) * 4      # cat + h1 in f32
                 + 3 * tb * slab * 4                 # zs / xs / sum in f32
                 + tb * hidden * s_item              # h2 bf16
                 + bytes_w)
    vmem_limit = int(min(max(2 * vmem_need, 32 << 20), 56 << 20))

    flops = 2 * b_pad * (in_dim * hidden + hidden * (slab + hidden) + hidden * slab)
    cost = pl.CostEstimate(
        flops=int(flops),
        transcendentals=0,
        bytes_accessed=int(b_pad * in_dim * x_item + b_pad * slab * s_item + bytes_w),
    )

    resident = lambda shape: pl.BlockSpec(shape, lambda i: (0, 0))  # VMEM-resident across steps

    out = pl.pallas_call(
        autoencoder_kernel,
        out_shape=jax.ShapeDtypeStruct((b_pad, slab), store_dtype),
        grid=grid,
        in_specs=[
            pl.BlockSpec((tb, in_dim), lambda i: (i, 0)),     # x streams per batch tile
            resident((in_dim, hidden)), resident((1, hidden)),
            resident((hidden, slab + hidden)), resident((1, slab + hidden)),
            resident((hidden, slab)), resident((1, slab)),
        ],
        out_specs=pl.BlockSpec((tb, slab), lambda i: (i, 0)),
        compiler_params=pltpu.CompilerParams(
            dimension_semantics=("parallel",),
            vmem_limit_bytes=vmem_limit),
        cost_estimate=cost,
    )(xp,
      packed["w1"], packed["b1"],
      packed["wcat"], packed["bcat"],
      packed["w4"], packed["b4"])

    # Consumers that can take the packed [x_hat | z | pad] slab should use `out` directly;
    # these slices are views of the lane-dense slab for API parity with the PyTorch module.
    x_hat = out[:B, :in_dim]
    z = out[:B, z_off:z_off + latent]
    return x_hat, z


def init_params(key, input_dim, latent_dim, hidden=128):
    """PyTorch nn.Linear default init U(-1/sqrt(fan_in), 1/sqrt(fan_in)); W stored as (fan_in, fan_out)."""
    def linear(k, fan_in, fan_out):
        kw, kb = jax.random.split(k)
        bound = 1.0 / jnp.sqrt(fan_in)
        w = jax.random.uniform(kw, (fan_in, fan_out), jnp.float32, -bound, bound)
        b = jax.random.uniform(kb, (1, fan_out), jnp.float32, -bound, bound)
        return w, b

    k1, k2, k3, k4 = jax.random.split(key, 4)
    w1, b1 = linear(k1, input_dim, hidden)
    w2, b2 = linear(k2, hidden, latent_dim)
    w3, b3 = linear(k3, latent_dim, hidden)
    w4, b4 = linear(k4, hidden, input_dim)
    return dict(w1=w1, b1=b1, w2=w2, b2=b2, w3=w3, b3=b3, w4=w4, b4=b4)


def reference_forward_f32(x, p):
    """Exact PyTorch forward semantics in float32."""
    h1 = jnp.maximum(x @ p["w1"] + p["b1"], 0.0)
    z = h1 @ p["w2"] + p["b2"]
    h2 = jnp.maximum(z @ p["w3"] + p["b3"], 0.0)
    x_hat = h2 @ p["w4"] + p["b4"]
    return x_hat, z


if __name__ == "__main__":
    B, INPUT_DIM, LATENT_DIM = 12, 32, 8   # B not a multiple of the tile -> exercises padding path

    key = jax.random.PRNGKey(0)
    k_x, k_p = jax.random.split(key)
    x = jax.random.normal(k_x, (B, INPUT_DIM), jnp.float32)
    params = init_params(k_p, INPUT_DIM, LATENT_DIM)

    packed, meta = pack_params(params, store_dtype=jnp.bfloat16)
    fwd = jax.jit(functools.partial(autoencoder_forward, packed=packed, meta=meta))

    x_hat, z = fwd(x)
    x_hat = jax.block_until_ready(x_hat)
    z = jax.block_until_ready(z)

    x_hat_ref, z_ref = reference_forward_f32(x, params)

    assert x_hat.shape == (B, INPUT_DIM) and z.shape == (B, LATENT_DIM)
    # Kernel stores/computes with bf16 inputs and f32 MXU accumulation (and folds w2@w3 in f32);
    # compare against the exact f32 reference with bf16-level tolerance.
    assert jnp.allclose(x_hat.astype(jnp.float32), x_hat_ref, atol=5e-2, rtol=5e-2)
    assert jnp.allclose(z.astype(jnp.float32), z_ref, atol=5e-2, rtol=5e-2)

    print("KERNEL_OK")
</pallas_src>

<mosaic_0001>
module attributes {stable_mosaic.version = 11 : i64} {
  func.func @autoencoder_kernel(%arg0: i32, %arg1: memref<16x32xf32, #tpu.memory_space<vmem>>, %arg2: memref<32x128xbf16, #tpu.memory_space<vmem>>, %arg3: memref<1x128xbf16, #tpu.memory_space<vmem>>, %arg4: memref<128x256xbf16, #tpu.memory_space<vmem>>, %arg5: memref<1x256xbf16, #tpu.memory_space<vmem>>, %arg6: memref<128x128xbf16, #tpu.memory_space<vmem>>, %arg7: memref<1x128xbf16, #tpu.memory_space<vmem>>, %arg8: memref<16x128xbf16, #tpu.memory_space<vmem>>) attributes {dimension_semantics = [#tpu.dimension_semantics<parallel>], iteration_bounds = array<i64: 1>, scalar_prefetch = 0 : i64, scratch_operands = 0 : i64, tpu.core_type = #tpu.core_type<tc>, window_params = [{transform_indices = @transform_0, window_bounds = array<i64: 16, 32>}, {pipeline_mode = #tpu.pipeline_mode<synchronous>, transform_indices = @transform_1, window_bounds = array<i64: 32, 128>}, {pipeline_mode = #tpu.pipeline_mode<synchronous>, transform_indices = @transform_2, window_bounds = array<i64: 1, 128>}, {pipeline_mode = #tpu.pipeline_mode<synchronous>, transform_indices = @transform_3, window_bounds = array<i64: 128, 256>}, {pipeline_mode = #tpu.pipeline_mode<synchronous>, transform_indices = @transform_4, window_bounds = array<i64: 1, 256>}, {pipeline_mode = #tpu.pipeline_mode<synchronous>, transform_indices = @transform_5, window_bounds = array<i64: 128, 128>}, {pipeline_mode = #tpu.pipeline_mode<synchronous>, transform_indices = @transform_6, window_bounds = array<i64: 1, 128>}, {transform_indices = @transform_7, window_bounds = array<i64: 16, 128>}]} {
    %c0 = arith.constant 0 : index
    %c0_0 = arith.constant 0 : index
    %0 = vector.load %arg1[%c0, %c0_0] : memref<16x32xf32, #tpu.memory_space<vmem>>, vector<16x32xf32>
    %1 = arith.truncf %0 : vector<16x32xf32> to vector<16x32xbf16>
    %c0_1 = arith.constant 0 : index
    %c0_2 = arith.constant 0 : index
    %2 = vector.load %arg2[%c0_1, %c0_2] : memref<32x128xbf16, #tpu.memory_space<vmem>>, vector<32x128xbf16>
    %cst = arith.constant dense<0.000000e+00> : vector<16x128xf32>
    %3 = tpu.matmul %1, %2, %cst {dimension_numbers = #tpu.dot_dimension_numbers<[1], [0], [0], [1], [0, 0, 1, 1], [], []>} : vector<16x32xbf16>, vector<32x128xbf16>, vector<16x128xf32> -> vector<16x128xf32>
    %c0_3 = arith.constant 0 : index
    %c0_4 = arith.constant 0 : index
    %4 = vector.load %arg3[%c0_3, %c0_4] : memref<1x128xbf16, #tpu.memory_space<vmem>>, vector<1x128xbf16>
    %5 = arith.extf %4 : vector<1x128xbf16> to vector<1x128xf32>
    %6 = vector.broadcast %5 : vector<1x128xf32> to vector<16x128xf32>
    %7 = arith.addf %3, %6 : vector<16x128xf32>
    %cst_5 = arith.constant 0.000000e+00 : f32
    %8 = vector.broadcast %cst_5 : f32 to vector<16x128xf32>
    %9 = arith.maximumf %7, %8 : vector<16x128xf32>
    %10 = arith.truncf %9 : vector<16x128xf32> to vector<16x128xbf16>
    %c0_6 = arith.constant 0 : index
    %c0_7 = arith.constant 0 : index
    %11 = vector.load %arg4[%c0_6, %c0_7] : memref<128x256xbf16, #tpu.memory_space<vmem>>, vector<128x256xbf16>
    %cst_8 = arith.constant dense<0.000000e+00> : vector<16x256xf32>
    %12 = tpu.matmul %10, %11, %cst_8 {dimension_numbers = #tpu.dot_dimension_numbers<[1], [0], [0], [1], [0, 0, 1, 1], [], []>} : vector<16x128xbf16>, vector<128x256xbf16>, vector<16x256xf32> -> vector<16x256xf32>
    %c0_9 = arith.constant 0 : index
    %c0_10 = arith.constant 0 : index
    %13 = vector.load %arg5[%c0_9, %c0_10] : memref<1x256xbf16, #tpu.memory_space<vmem>>, vector<1x256xbf16>
    %14 = arith.extf %13 : vector<1x256xbf16> to vector<1x256xf32>
    %15 = vector.broadcast %14 : vector<1x256xf32> to vector<16x256xf32>
    %16 = arith.addf %12, %15 : vector<16x256xf32>
    %17 = vector.extract_strided_slice %16 {offsets = [0, 0], sizes = [16, 128], strides = [1, 1]} : vector<16x256xf32> to vector<16x128xf32>
    %18 = vector.extract_strided_slice %16 {offsets = [0, 128], sizes = [16, 128], strides = [1, 1]} : vector<16x256xf32> to vector<16x128xf32>
    %cst_11 = arith.constant 0.000000e+00 : f32
    %19 = vector.broadcast %cst_11 : f32 to vector<16x128xf32>
    %20 = arith.maximumf %18, %19 : vector<16x128xf32>
    %21 = arith.truncf %20 : vector<16x128xf32> to vector<16x128xbf16>
    %c0_12 = arith.constant 0 : index
    %c0_13 = arith.constant 0 : index
    %22 = vector.load %arg6[%c0_12, %c0_13] : memref<128x128xbf16, #tpu.memory_space<vmem>>, vector<128x128xbf16>
    %cst_14 = arith.constant dense<0.000000e+00> : vector<16x128xf32>
    %23 = tpu.matmul %21, %22, %cst_14 {dimension_numbers = #tpu.dot_dimension_numbers<[1], [0], [0], [1], [0, 0, 1, 1], [], []>} : vector<16x128xbf16>, vector<128x128xbf16>, vector<16x128xf32> -> vector<16x128xf32>
    %c0_15 = arith.constant 0 : index
    %c0_16 = arith.constant 0 : index
    %24 = vector.load %arg7[%c0_15, %c0_16] : memref<1x128xbf16, #tpu.memory_space<vmem>>, vector<1x128xbf16>
    %25 = arith.extf %24 : vector<1x128xbf16> to vector<1x128xf32>
    %26 = vector.broadcast %25 : vector<1x128xf32> to vector<16x128xf32>
    %27 = arith.addf %23, %26 : vector<16x128xf32>
    %28 = arith.addf %27, %17 : vector<16x128xf32>
    %29 = arith.truncf %28 : vector<16x128xf32> to vector<16x128xbf16>
    %c0_17 = arith.constant 0 : index
    %c0_18 = arith.constant 0 : index
    %30 = vector.load %arg8[%c0_17, %c0_18] : memref<16x128xbf16, #tpu.memory_space<vmem>>, vector<16x128xbf16>
    tpu.vector_store %arg8[%c0_17, %c0_18], %29 {strides = array<i32>} : memref<16x128xbf16, #tpu.memory_space<vmem>>, vector<16x128xbf16>,
    return
  }
  func.func @transform_0(%arg0: i32) -> (i32, i32) {
    %c0_i32 = arith.constant 0 : i32
    %c0_i32_0 = arith.constant 0 : i32
    return %arg0, %c0_i32 : i32, i32
  }
  func.func @transform_1(%arg0: i32) -> (i32, i32) {
    %c0_i32 = arith.constant 0 : i32
    %c0_i32_0 = arith.constant 0 : i32
    %c0_i32_1 = arith.constant 0 : i32
    return %c0_i32, %c0_i32_0 : i32, i32
  }
  func.func @transform_2(%arg0: i32) -> (i32, i32) {
    %c0_i32 = arith.constant 0 : i32
    %c0_i32_0 = arith.constant 0 : i32
    %c0_i32_1 = arith.constant 0 : i32
    return %c0_i32, %c0_i32_0 : i32, i32
  }
  func.func @transform_3(%arg0: i32) -> (i32, i32) {
    %c0_i32 = arith.constant 0 : i32
    %c0_i32_0 = arith.constant 0 : i32
    %c0_i32_1 = arith.constant 0 : i32
    return %c0_i32, %c0_i32_0 : i32, i32
  }
  func.func @transform_4(%arg0: i32) -> (i32, i32) {
    %c0_i32 = arith.constant 0 : i32
    %c0_i32_0 = arith.constant 0 : i32
    %c0_i32_1 = arith.constant 0 : i32
    return %c0_i32, %c0_i32_0 : i32, i32
  }
  func.func @transform_5(%arg0: i32) -> (i32, i32) {
    %c0_i32 = arith.constant 0 : i32
    %c0_i32_0 = arith.constant 0 : i32
    %c0_i32_1 = arith.constant 0 : i32
    return %c0_i32, %c0_i32_0 : i32, i32
  }
  func.func @transform_6(%arg0: i32) -> (i32, i32) {
    %c0_i32 = arith.constant 0 : i32
    %c0_i32_0 = arith.constant 0 : i32
    %c0_i32_1 = arith.constant 0 : i32
    return %c0_i32, %c0_i32_0 : i32, i32
  }
  func.func @transform_7(%arg0: i32) -> (i32, i32) {
    %c0_i32 = arith.constant 0 : i32
    %c0_i32_0 = arith.constant 0 : i32
    return %arg0, %c0_i32 : i32, i32
  }
}

</mosaic_0001>

<bundles_post_ra>
// kernel: autoencoder_forward.1
= control target key start
LH: loop header
LB: loop body
LE: loop exit
PB: predicated region body
PF: predicated region fallthrough
CT: control target
= control target key end

     0   :  { %12 = vsyncpa [#allocation3], 0  ;;  %s676_s0 = inlined_call_operand.vmem [shape: f32[16,32], index: 0, kind: input, shape index: {}]   ;;  %s677_s1 = inlined_call_operand.vmem [shape: bf16[32,128], index: 1, kind: input, shape index: {}]   ;;  %s678_s2 = inlined_call_operand.vmem [shape: bf16[1,128], index: 2, kind: input, shape index: {}]   ;;  %s679_s3 = inlined_call_operand.hbm [shape: bf16[128,256], index: 3, kind: input, shape index: {}]   ;;  %s680_s4 = inlined_call_operand.vmem [shape: bf16[1,256], index: 4, kind: input, shape index: {}]   ;;  %s681_s5 = inlined_call_operand.hbm [shape: bf16[128,128], index: 5, kind: input, shape index: {}]   ;;  %s682_s6 = inlined_call_operand.vmem [shape: bf16[1,128], index: 6, kind: input, shape index: {}]   ;;  %s683_s7 = inlined_call_operand.vmem [shape: bf16[16,128], index: 7, kind: output, shape index: {}]  }
   0x1   :  { %13 = vsyncpa [#allocation5], 0  ;;  %s583_s24 = smov [#allocation2]  }
   0x2   :  { %s25_s25 = sshll.u32 %s583_s24, 4  ;;  %s26_s25 = int_to_ptr.vmem [resolvable:$true] %s25_s25 }
   0x3   :  { %s547_s26 = scalar_lea.vmem %s26_s25, 2048  ;;  %p552_p1 = scmp.lt.s32.totalorder %s26_s25, %s26_s25 }
   0x4   :  { %p548_p0 = scmp.ne.s32.totalorder %s26_s25, %s547_s26  ;;  %p553_p2 = scmp.lt.s32.totalorder %s547_s26, %s547_s26 }
   0x6   :  { %p554_p3 = por %p553_p2, %p552_p1 }
   0x8   :  { %p555_p4 = pnand %p554_p3, %p548_p0 }
   0xa   :  { %558 = shalt.err (!%p555_p4)
}
   0xb   :  { %s584_s27 = smov 128   ;;  %s585_s28 = smov 8  }
   0xc   :  { %31 = dma.hbm_to_vmem [thread:$0]  %s679_s3, 2048, %s26_s25, [#allocation3], %s584_s27, %s584_s27, %s585_s28  }
   0xd   :  { %s586_s8 = smov [#allocation4]  }
   0xe   :  { %s39_s9 = sshll.u32 %s586_s8, 4  ;;  %s40_s9 = int_to_ptr.vmem [resolvable:$true] %s39_s9 }
   0xf   :  { %s567_s10 = scalar_lea.vmem %s40_s9, 1024  ;;  %p572_p6 = scmp.lt.s32.totalorder %s40_s9, %s40_s9 }
  0x10   :  { %p568_p5 = scmp.ne.s32.totalorder %s40_s9, %s567_s10  ;;  %p573_p7 = scmp.lt.s32.totalorder %s567_s10, %s567_s10 }
  0x12   :  { %p574_p8 = por %p573_p7, %p572_p6 }
  0x14   :  { %p575_p9 = pnand %p574_p8, %p568_p5 }
  0x16   :  { %578 = shalt.err (!%p575_p9)
}
  0x17   :  { %s587_s11 = smov 64   ;;  %s588_s12 = smov 4  }
  0x18   :  { %45 = dma.hbm_to_vmem [thread:$0]  %s681_s5, 1024, %s40_s9, [#allocation5], %s587_s11, %s587_s11, %s588_s12  }
  0x19   :  { %579 = dma.done.wait [#allocation3], 2048  }
  0x1a   :  { %580 = vsyncadd [#allocation3], 4294965248 }
  0x1b   :  { %581 = dma.done.wait [#allocation5], 1024  }
  0x1c   :  { %582 = vsyncadd [#allocation5], 4294966272  ;;  %v589_v0 = vmov 0.0   ;;  %vm590_vm0 = vmmov 0   ;;  %v505_v1 = vld [vmem:[%s677_s1 + $0x8] sm:$0xff]   ;;  %v506_v2 = vld [vmem:[%s677_s1] sm:$0xff]   ;;  %v64_v28 = vlaneseq }
  0x1d   :  { %468 = vmatprep.subr.bf16.mxu0 %v589_v0  ;;  %472 = vmatprep.mubr.msk.bf16.mxu0 %vm590_vm0, %v589_v0  ;;  %v55_v3 = vld [vmem:[%s676_s0] sm:$0xff]  ;;  %v56_v4 = vld [vmem:[%s676_s0 + $0x8] sm:$0xff]  ;;  %v507_v5 = vld [vmem:[#allocation2 + $0x74] ss:$8 sps:$4 sm:$0xff]   ;;  %vm80_vm1 = vcmask 261120   ;;  %v591_v22 = vmov 0  }
  0x1e   :  { %469 = vmatpush3.bf16.msra.mxu0 %v505_v1  ;;  %v509_v6 = vld [vmem:[#allocation2 + $0x70] ss:$8 sps:$4 sm:$0xff]   ;;  %v510_v7 = vld [vmem:[#allocation2 + $0x64] ss:$8 sps:$4 sm:$0xff]   ;;  %v57_v8 = vpack.c.bf16 %v56_v4, %v55_v3  ;;  %245 = vmatprep.subr.bf16.mxu1 %v507_v5  ;;  %v512_v9 = vld [vmem:[#allocation2 + $0x60] ss:$8 sps:$4 sm:$0xff]  }
  0x1f   :  { %470 = vmatprep.subr.bf16.mxu0 %v589_v0  ;;  %246 = vmatpush1.bf16.msra.mxu1 %v509_v6  ;;  %v513_v10 = vld [vmem:[#allocation2 + $0x54] ss:$8 sps:$4 sm:$0xff]   ;;  %v515_v11 = vld [vmem:[#allocation2 + $0x50] ss:$8 sps:$4 sm:$0xff]   ;;  %v516_v12 = vld [vmem:[#allocation2 + $0x44] ss:$8 sps:$4 sm:$0xff]  }
  0x20   :  { %247 = vmatprep.subr.bf16.mxu1 %v510_v7  ;;  %v518_v13 = vld [vmem:[#allocation2 + $0x40] ss:$8 sps:$4 sm:$0xff]   ;;  %v519_v14 = vld [vmem:[#allocation2 + $0x34] ss:$8 sps:$4 sm:$0xff]   ;;  %v521_v15 = vld [vmem:[#allocation2 + $0x30] ss:$8 sps:$4 sm:$0xff]   ;;  %277 = vmatprep.mubr.bf16.mxu1 %v591_v22 }
  0x21   :  { %v522_v16 = vld [vmem:[#allocation2 + $0x24] ss:$8 sps:$4 sm:$0xff]   ;;  %v524_v17 = vld [vmem:[#allocation2 + $0x20] ss:$8 sps:$4 sm:$0xff]   ;;  %v525_v18 = vld [vmem:[#allocation2 + $0x14] ss:$8 sps:$4 sm:$0xff]  }
  0x22   :  { %471 = vmatpush3.bf16.msra.mxu0 %v506_v2  ;;  %v527_v19 = vld [vmem:[#allocation2 + $0x10] ss:$8 sps:$4 sm:$0xff]   ;;  %v528_v20 = vld [vmem:[#allocation2 + $0x4] ss:$8 sps:$4 sm:$0xff]   ;;  %v530_v21 = vld [vmem:[#allocation2] ss:$8 sps:$4 sm:$0xff]  }
  0x23   :  { %476 = vmatprep.subr.bf16.mxu0 %v589_v0  ;;  %248 = vmatpush1.bf16.msra.mxu1 %v512_v9  ;;  %v531_v23 = vld [vmem:[#allocation4 + $0x38] sm:$0xff]   ;;  %v532_v24 = vld [vmem:[#allocation4 + $0x30] sm:$0xff]   ;;  %v533_v25 = vld [vmem:[#allocation4 + $0x28] sm:$0xff]   ;;  %v65_v29 = vshrl.u32 %v64_v28, 7 }
  0x24   :  { %249 = vmatprep.subr.bf16.mxu1 %v513_v10  ;;  %v534_v26 = vld [vmem:[#allocation4 + $0x20] sm:$0xff]   ;;  %v535_v27 = vld [vmem:[#allocation4 + $0x18] sm:$0xff]   ;;  %v536_v43 = vld [vmem:[#allocation4 + $0x10] sm:$0xff]  }
  0x25   :  { %473 = vmatmul.mubr.msk.bf16.vlgmr.msra.gmra.mxu0 %vm80_vm1, %v57_v8  ;;  %v62_v30 = vld [vmem:[%s678_s2] sm:$0x1]  ;;  %v66_v32 = vsub.s32 0, %v65_v29  ;;  %v537_v44 = vld [vmem:[#allocation4 + $0x8] sm:$0xff]   ;;  %v153_v47 = vsub.s32 2, %v65_v29 }
  0x26   :  { %492 = vmatprep.mubr.msk.bf16.mxu0 %vm590_vm0, %v589_v0  ;;  %477 = vmatpush3.bf16.msra.mxu0 %v531_v23  ;;  %v63_v31 = vunpack.c.l.bf16 %v62_v30  ;;  %v538_v45 = vld [vmem:[#allocation4] sm:$0xff]  }
  0x27   :  { %250 = vmatpush1.bf16.msra.mxu1 %v515_v11  ;;  %478 = vmatprep.subr.bf16.mxu0 %v589_v0  ;;  %v144_v46 = vld [vmem:[%s680_s4] sm:$0x3] }
  0x28   :  { %251 = vmatprep.subr.bf16.mxu1 %v516_v12  ;;  %v67_v33 = vrot.slane %v63_v31, %v66_v32  ;;  %v145_v48 = vunpack.c.l.bf16 %v144_v46  ;;  %v307_v60 = vld [vmem:[%s682_s6] sm:$0x1] }
  0x29   :  { %v308_v61 = vunpack.c.l.bf16 %v307_v60 }
  0x2a   :  { %479 = vmatpush3.bf16.msra.mxu0 %v532_v24  ;;  %v154_v49 = vrot.slane %v145_v48, %v153_v47  ;;  %v150_v62 = vrot.slane %v145_v48, %v66_v32 }
  0x2b   :  { %252 = vmatpush1.bf16.msra.mxu1 %v518_v13  ;;  %480 = vmatprep.subr.bf16.mxu0 %v589_v0  ;;  %v312_v63 = vrot.slane %v308_v61, %v66_v32 }
  0x2c   :  { %253 = vmatprep.subr.bf16.mxu1 %v519_v14  ;;  %v164_v51 = vrot.slane %v154_v49, %v66_v32  ;;  %v160_v1 = vrot.slane %v150_v62, %v66_v32 }
  0x2e   :  { %481 = vmatpush3.bf16.msra.mxu0 %v533_v25 }
  0x2f   :  { %254 = vmatpush1.bf16.msra.mxu1 %v521_v15  ;;  %482 = vmatprep.subr.bf16.mxu0 %v589_v0 }
  0x30   :  { %255 = vmatprep.subr.bf16.mxu1 %v522_v16 }
  0x32   :  { %483 = vmatpush3.bf16.msra.mxu0 %v534_v26 }
  0x33   :  { %256 = vmatpush1.bf16.msra.mxu1 %v524_v17  ;;  %484 = vmatprep.subr.bf16.mxu0 %v589_v0 }
  0x34   :  { %257 = vmatprep.subr.bf16.mxu1 %v525_v18 }
  0x36   :  { %485 = vmatpush3.bf16.msra.mxu0 %v535_v27 }
  0x37   :  { %258 = vmatpush1.bf16.msra.mxu1 %v527_v19  ;;  %486 = vmatprep.subr.bf16.mxu0 %v589_v0 }
  0x38   :  { %259 = vmatprep.subr.bf16.mxu1 %v528_v20 }
  0x3a   :  { %487 = vmatpush3.bf16.msra.mxu0 %v536_v43 }
  0x3b   :  { %260 = vmatpush1.bf16.msra.mxu1 %v530_v21  ;;  %488 = vmatprep.subr.bf16.mxu0 %v589_v0 }
  0x3e   :  { %489 = vmatpush3.bf16.msra.mxu0 %v537_v44 }
  0x3f   :  { %490 = vmatprep.subr.bf16.mxu0 %v589_v0 }
  0x42   :  { %491 = vmatpush3.bf16.msra.mxu0 %v538_v45 }
  0xe5   :  { %v118_v34 = vpop.f32.mrf.mxu0 }
  0xe6   :  { %v119_v36 = vadd.f32 %v118_v34, %v67_v33 }
  0xe7   :  { %v474_v35 = vpop.f32.mrf.mxu0 }
  0xe8   :  { %v125_v40 = vmax.f32 %v119_v36, 0.0 }
  0xe9   :  { %v121_v37 = vpop.f32.mrf.mxu0 }
  0xea   :  { %v122_v38 = vadd.f32 %v121_v37, %v67_v33 }
  0xeb   :  { %v475_v39 = vpop.f32.mrf.mxu0 }
  0xec   :  { %v126_v41 = vmax.f32 %v122_v38, 0.0 }
  0xee   :  { %v127_v42 = vpack.c.bf16 %v126_v41, %v125_v40 }
  0xf0   :  { %278 = vmatmul.mubr.bf16.vlgmr.msra.gmra.mxu1 %v127_v42 }
 0x1b0   :  { %v279_v50 = vpop.f32.mrf.mxu1 }
 0x1b1   :  { %v280_v5 = vadd.f32 %v279_v50, %v160_v1 }
 0x1b2   :  { %v281_v52 = vpop.f32.mrf.mxu1 }
 0x1b3   :  { %v282_v54 = vadd.f32 %v281_v52, %v164_v51 }
 0x1b4   :  { %v283_v53 = vpop.f32.mrf.mxu1 }
 0x1b5   :  { %v288_v57 = vmax.f32 %v282_v54, 0.0  ;;  %v284_v6 = vadd.f32 %v283_v53, %v160_v1 }
 0x1b6   :  { %v285_v55 = vpop.f32.mrf.mxu1 }
 0x1b7   :  { %v286_v56 = vadd.f32 %v285_v55, %v164_v51 }
 0x1b9   :  { %v289_v58 = vmax.f32 %v286_v56, 0.0 }
 0x1bb   :  { %v290_v59 = vpack.c.bf16 %v289_v58, %v288_v57 }
 0x1bd   :  { %493 = vmatmul.mubr.bf16.vlgmr.msra.gmra.mxu0 %v290_v59 }
 0x27d   :  { %v395_v0 = vpop.f32.mrf.mxu0 }
 0x27e   :  { %v396_v3 = vadd.f32 %v395_v0, %v312_v63 }
 0x27f   :  { %v494_v2 = vpop.f32.mrf.mxu0 }
 0x280   :  { %v402_v9 = vadd.f32 %v396_v3, %v280_v5 }
 0x281   :  { %v398_v4 = vpop.f32.mrf.mxu0 }
 0x282   :  { %v399_v7 = vadd.f32 %v398_v4, %v312_v63 }
 0x283   :  { %v495_v8 = vpop.f32.mrf.mxu0 }
 0x284   :  { %v403_v10 = vadd.f32 %v399_v7, %v284_v6 }
 0x286   :  { %v454_v11 = vpack.c.bf16 %v403_v10, %v402_v9 }
 0x288   :  { %455 = vst [vmem:[%s683_s7] sm:$0xff] %v454_v11  }
 0x289   :  { %418 = vsyncpa [#allocation3], 1 }
 0x28a   :  { %419 = vsyncpa [#allocation5], 1 }

</bundles_post_ra>
